<compile_context>
chip_gen: v6e
topology: v6e:2x2x1
jax: 0.10.0
libtpu: 0.0.40
codegen_flags: <defaults>
</compile_context>

<pallas_src>
import functools

import jax
import jax.numpy as jnp
from jax import lax
from jax.experimental import pallas as pl
from jax.experimental.pallas import tpu as pltpu


def timm_model_kernel(patches_ref, wconv_ref, bconv_ref, wfc_ref, bfc_ref,
                      out_ref, acc_ref, *, inv_p):
    # patches_ref: (TILE_P, Kp) bf16  im2col patches for this (batch, spatial) tile
    # wconv_ref:   (Kp, Fp)     bf16  conv weight (constant index_map -> VMEM-resident)
    # bconv_ref:   (1, Fp)      f32
    # wfc_ref:     (Fp, NCp)    bf16  fc head weight (VMEM-resident)
    # bfc_ref:     (1, NCp)     f32
    # out_ref:     (8, NCp)     f32   lane+sublane-dense logits tile for this batch
    # acc_ref:     (1, Fp)      f32   GAP column-sum accumulator (VMEM scratch)
    p = pl.program_id(1)

    @pl.when(p == 0)
    def _init():
        acc_ref[...] = jnp.zeros_like(acc_ref)

    # conv as one MXU matmul on this M tile: bf16 operands, f32 accumulation
    h = jnp.dot(patches_ref[...], wconv_ref[...],
                preferred_element_type=jnp.float32)               # (TILE_P, Fp)
    h = jnp.maximum(h + bconv_ref[...], 0.0)

    # partial global-average-pool sum as a (1, TILE_P) @ (TILE_P, Fp) MXU matmul
    # (keeps the sublane reduction off the XLU); bf16 operands, f32 accumulation
    # into the persistent VMEM accumulator.
    ones_row = jnp.ones((1, h.shape[0]), dtype=jnp.bfloat16)
    acc_ref[...] += jnp.dot(ones_row, h.astype(jnp.bfloat16),
                            preferred_element_type=jnp.float32)   # (1, Fp)

    @pl.when(p == pl.num_programs(1) - 1)
    def _finalize():
        feat = acc_ref[...] * inv_p                               # (1, Fp) f32
        logits = jnp.dot(feat.astype(jnp.bfloat16), wfc_ref[...],
                         preferred_element_type=jnp.float32)
        logits = logits + bfc_ref[...]                            # (1, NCp)
        # broadcast to 8 sublanes so the final store is lane+sublane dense
        out_ref[...] = jnp.broadcast_to(logits, out_ref.shape)


def _round_up(n, m):
    return (n + m - 1) // m * m


def im2col_3x3(x_nchw):
    """NCHW -> (B, H*W, 9*C) im2col patches for a 3x3, stride-1, pad-1 conv."""
    x = jnp.transpose(x_nchw, (0, 2, 3, 1))                       # B, H, W, C
    B, H, W, C = x.shape
    xp = jnp.pad(x, ((0, 0), (1, 1), (1, 1), (0, 0)))
    cols = []
    for ki in range(3):
        for kj in range(3):
            cols.append(xp[:, ki:ki + H, kj:kj + W, :])           # (B, H, W, C)
    patches = jnp.concatenate(cols, axis=-1)                      # (B, H, W, 9C)
    return patches.reshape(B, H * W, 9 * C)


def timm_model_forward(x_nchw, wconv, bconv, wfc, bfc, *, tile_p=128):
    B, C, H, W = x_nchw.shape
    K = 9 * C
    F = wconv.shape[1]
    NC = wfc.shape[1]
    P = H * W

    # TODO(synk): make the lane alignment generation-dependent (256-wide K/N
    # tiles on v6e/v7x MXUs, 128 on v5e) once K/F are real-backbone sized; at
    # these toy sizes 128 minimizes zero-padding.
    Kp = _round_up(K, 128)
    Fp = _round_up(F, 128)
    NCp = _round_up(NC, 128)

    tile_p = min(tile_p, P)
    assert P % tile_p == 0 and tile_p % 8 == 0, (P, tile_p)
    p_tiles = P // tile_p

    # TODO(synk): for real backbone shapes (large C/H/W) fold the 3x3 im2col
    # into the kernel (9 shifted bf16 matmuls over an NHWC tile accumulating
    # into the same f32 acc) to kill the 9x HBM read amplification; at C=4 the
    # shifted tiles would be only 4/128 lanes dense, so wrapper im2col wins here.
    patches = im2col_3x3(x_nchw).reshape(B * P, K).astype(jnp.bfloat16)
    patches = jnp.pad(patches, ((0, 0), (0, Kp - K)))             # (B*P, Kp)

    wconv_p = jnp.pad(wconv.astype(jnp.bfloat16),
                      ((0, Kp - K), (0, Fp - F)))                 # (Kp, Fp)
    bconv_p = jnp.pad(bconv.astype(jnp.float32).reshape(1, F),
                      ((0, 0), (0, Fp - F)))                      # (1, Fp)
    wfc_p = jnp.pad(wfc.astype(jnp.bfloat16),
                    ((0, Fp - F), (0, NCp - NC)))                 # (Fp, NCp)
    bfc_p = jnp.pad(bfc.astype(jnp.float32).reshape(1, NC),
                    ((0, 0), (0, NCp - NC)))                      # (1, NCp)

    kernel = functools.partial(timm_model_kernel, inv_p=1.0 / P)

    out = pl.pallas_call(
        kernel,
        out_shape=jax.ShapeDtypeStruct((B * 8, NCp), jnp.float32),
        grid_spec=pltpu.PrefetchScalarGridSpec(
            num_scalar_prefetch=0,
            # batch axis "parallel" (megacore-shardable), spatial-tile axis
            # "arbitrary" (revisits the GAP accumulator + output block).
            grid=(B, p_tiles),
            in_specs=[
                # M-tiled, double-buffered patch stream
                pl.BlockSpec((tile_p, Kp), lambda b, p: (b * p_tiles + p, 0)),
                # weights / biases: constant index_map -> stay VMEM-resident
                pl.BlockSpec((Kp, Fp), lambda b, p: (0, 0)),
                pl.BlockSpec((1, Fp), lambda b, p: (0, 0)),
                pl.BlockSpec((Fp, NCp), lambda b, p: (0, 0)),
                pl.BlockSpec((1, NCp), lambda b, p: (0, 0)),
            ],
            out_specs=pl.BlockSpec((8, NCp), lambda b, p: (b, 0)),
            scratch_shapes=[pltpu.VMEM((1, Fp), jnp.float32)],
        ),
        compiler_params=pltpu.CompilerParams(
            dimension_semantics=("parallel", "arbitrary"),
            vmem_limit_bytes=16 * 1024 * 1024),
    )(patches, wconv_p, bconv_p, wfc_p, bfc_p)

    # keep row 0 of each batch's 8-sublane tile, drop class-lane padding
    return out.reshape(B, 8, NCp)[:, 0, :NC]


if __name__ == "__main__":
    # Small shapes consistent with the module's forward:
    #   image batch -> backbone features -> fc logits
    B, C, H, W = 2, 4, 16, 16
    num_features = 32          # self.model.num_features
    num_classes = 8            # nn.Linear(num_features, num_classes)

    key = jax.random.PRNGKey(0)
    kx, kwc, kbc, kwf, kbf = jax.random.split(key, 5)

    x = jax.random.normal(kx, (B, C, H, W), dtype=jnp.float32)

    # Deterministic synthetic parameters (no checkpoint loading).
    wconv = jax.random.normal(kwc, (9 * C, num_features), jnp.float32) * 0.05
    bconv = jax.random.normal(kbc, (num_features,), jnp.float32) * 0.01
    wfc = jax.random.normal(kwf, (num_features, num_classes), jnp.float32) * 0.05
    bfc = jax.random.normal(kbf, (num_classes,), jnp.float32) * 0.01

    out = timm_model_forward(x, wconv, bconv, wfc, bfc)
    out = jax.block_until_ready(out)

    # Pure-JAX reference modeling the kernel's bf16-operand / f32-accum math.
    def bf(v):
        return v.astype(jnp.bfloat16).astype(jnp.float32)

    patches = im2col_3x3(x)
    h = jnp.maximum(
        jnp.einsum("bpk,kf->bpf", bf(patches), bf(wconv),
                   precision=lax.Precision.HIGHEST) + bconv[None, None, :],
        0.0)
    feat = jnp.mean(bf(h), axis=1)
    ref = jnp.dot(bf(feat), bf(wfc),
                  precision=lax.Precision.HIGHEST) + bfc[None, :]

    assert out.shape == (B, num_classes)
    err = float(jnp.max(jnp.abs(out - ref)))
    assert jnp.allclose(out, ref, atol=1e-3, rtol=1e-3), err

    # TODO(synk): the real timm backbone (arbitrary model_name, pretrained
    # weights) and optional LoRA/peft wrapping have no direct Pallas
    # equivalent; a 3x3-conv+ReLU+GAP backbone with matching feature/head
    # semantics is implemented instead.
    print("KERNEL_OK")
</pallas_src>

<mosaic_0001>
module attributes {stable_mosaic.version = 11 : i64} {
  func.func @timm_model_kernel(%arg0: i32, %arg1: i32, %arg2: memref<128x128xbf16, #tpu.memory_space<vmem>>, %arg3: memref<128x128xbf16, #tpu.memory_space<vmem>>, %arg4: memref<1x128xf32, #tpu.memory_space<vmem>>, %arg5: memref<128x128xbf16, #tpu.memory_space<vmem>>, %arg6: memref<1x128xf32, #tpu.memory_space<vmem>>, %arg7: memref<8x128xf32, #tpu.memory_space<vmem>>, %arg8: memref<1x128xf32, #tpu.memory_space<vmem>>) attributes {dimension_semantics = [#tpu.dimension_semantics<parallel>, #tpu.dimension_semantics<arbitrary>], iteration_bounds = array<i64: 2, 2>, scalar_prefetch = 0 : i64, scratch_operands = 1 : i64, tpu.core_type = #tpu.core_type<tc>, window_params = [{transform_indices = @transform_0, window_bounds = array<i64: 128, 128>}, {pipeline_mode = #tpu.pipeline_mode<synchronous>, transform_indices = @transform_1, window_bounds = array<i64: 128, 128>}, {pipeline_mode = #tpu.pipeline_mode<synchronous>, transform_indices = @transform_2, window_bounds = array<i64: 1, 128>}, {pipeline_mode = #tpu.pipeline_mode<synchronous>, transform_indices = @transform_3, window_bounds = array<i64: 128, 128>}, {pipeline_mode = #tpu.pipeline_mode<synchronous>, transform_indices = @transform_4, window_bounds = array<i64: 1, 128>}, {transform_indices = @transform_5, window_bounds = array<i64: 8, 128>}]} {
    %c0_i32 = arith.constant 0 : i32
    %0 = arith.cmpi eq, %arg1, %c0_i32 : i32
    %1 = arith.extui %0 : i1 to i32
    %c0_i32_0 = arith.constant 0 : i32
    %2 = arith.cmpi ne, %1, %c0_i32_0 : i32
    scf.if %2 {
      %cst_14 = arith.constant 0.000000e+00 : f32
      %20 = vector.broadcast %cst_14 : f32 to vector<1x128xf32>
      %c0_15 = arith.constant 0 : index
      %c0_16 = arith.constant 0 : index
      %21 = vector.load %arg8[%c0_15, %c0_16] : memref<1x128xf32, #tpu.memory_space<vmem>>, vector<1x128xf32>
      tpu.vector_store %arg8[%c0_15, %c0_16], %20 {strides = array<i32>} : memref<1x128xf32, #tpu.memory_space<vmem>>, vector<1x128xf32>,
    } else {
    }
    %c0 = arith.constant 0 : index
    %c0_1 = arith.constant 0 : index
    %3 = vector.load %arg2[%c0, %c0_1] : memref<128x128xbf16, #tpu.memory_space<vmem>>, vector<128x128xbf16>
    %c0_2 = arith.constant 0 : index
    %c0_3 = arith.constant 0 : index
    %4 = vector.load %arg3[%c0_2, %c0_3] : memref<128x128xbf16, #tpu.memory_space<vmem>>, vector<128x128xbf16>
    %cst = arith.constant dense<0.000000e+00> : vector<128x128xf32>
    %5 = tpu.matmul %3, %4, %cst {dimension_numbers = #tpu.dot_dimension_numbers<[1], [0], [0], [1], [0, 0, 1, 1], [], []>} : vector<128x128xbf16>, vector<128x128xbf16>, vector<128x128xf32> -> vector<128x128xf32>
    %c0_4 = arith.constant 0 : index
    %c0_5 = arith.constant 0 : index
    %6 = vector.load %arg4[%c0_4, %c0_5] : memref<1x128xf32, #tpu.memory_space<vmem>>, vector<1x128xf32>
    %7 = vector.broadcast %6 : vector<1x128xf32> to vector<128x128xf32>
    %8 = arith.addf %5, %7 : vector<128x128xf32>
    %cst_6 = arith.constant 0.000000e+00 : f32
    %9 = vector.broadcast %cst_6 : f32 to vector<128x128xf32>
    %10 = arith.maximumf %8, %9 : vector<128x128xf32>
    %cst_7 = arith.constant 1.000000e+00 : bf16
    %11 = vector.broadcast %cst_7 : bf16 to vector<1x128xbf16>
    %c0_8 = arith.constant 0 : index
    %c0_9 = arith.constant 0 : index
    %12 = vector.load %arg8[%c0_8, %c0_9] : memref<1x128xf32, #tpu.memory_space<vmem>>, vector<1x128xf32>
    %13 = arith.truncf %10 : vector<128x128xf32> to vector<128x128xbf16>
    %cst_10 = arith.constant dense<0.000000e+00> : vector<1x128xf32>
    %14 = tpu.matmul %11, %13, %cst_10 {dimension_numbers = #tpu.dot_dimension_numbers<[1], [0], [0], [1], [0, 0, 1, 1], [], []>} : vector<1x128xbf16>, vector<128x128xbf16>, vector<1x128xf32> -> vector<1x128xf32>
    %15 = arith.addf %12, %14 : vector<1x128xf32>
    %c0_11 = arith.constant 0 : index
    %c0_12 = arith.constant 0 : index
    %16 = vector.load %arg8[%c0_11, %c0_12] : memref<1x128xf32, #tpu.memory_space<vmem>>, vector<1x128xf32>
    tpu.vector_store %arg8[%c0_11, %c0_12], %15 {strides = array<i32>} : memref<1x128xf32, #tpu.memory_space<vmem>>, vector<1x128xf32>,
    %c1_i32 = arith.constant 1 : i32
    %17 = arith.cmpi eq, %arg1, %c1_i32 : i32
    %18 = arith.extui %17 : i1 to i32
    %c0_i32_13 = arith.constant 0 : i32
    %19 = arith.cmpi ne, %18, %c0_i32_13 : i32
    scf.if %19 {
      %c0_14 = arith.constant 0 : index
      %c0_15 = arith.constant 0 : index
      %20 = vector.load %arg8[%c0_14, %c0_15] : memref<1x128xf32, #tpu.memory_space<vmem>>, vector<1x128xf32>
      %cst_16 = arith.constant 3.906250e-03 : f32
      %21 = vector.broadcast %cst_16 : f32 to vector<1x128xf32>
      %22 = arith.mulf %20, %21 : vector<1x128xf32>
      %23 = arith.truncf %22 : vector<1x128xf32> to vector<1x128xbf16>
      %c0_17 = arith.constant 0 : index
      %c0_18 = arith.constant 0 : index
      %24 = vector.load %arg5[%c0_17, %c0_18] : memref<128x128xbf16, #tpu.memory_space<vmem>>, vector<128x128xbf16>
      %cst_19 = arith.constant dense<0.000000e+00> : vector<1x128xf32>
      %25 = tpu.matmul %23, %24, %cst_19 {dimension_numbers = #tpu.dot_dimension_numbers<[1], [0], [0], [1], [0, 0, 1, 1], [], []>} : vector<1x128xbf16>, vector<128x128xbf16>, vector<1x128xf32> -> vector<1x128xf32>
      %c0_20 = arith.constant 0 : index
      %c0_21 = arith.constant 0 : index
      %26 = vector.load %arg6[%c0_20, %c0_21] : memref<1x128xf32, #tpu.memory_space<vmem>>, vector<1x128xf32>
      %27 = arith.addf %25, %26 : vector<1x128xf32>
      %28 = vector.shape_cast %27 : vector<1x128xf32> to vector<1x128xf32>
      %29 = vector.broadcast %28 : vector<1x128xf32> to vector<8x128xf32>
      %c0_22 = arith.constant 0 : index
      %c0_23 = arith.constant 0 : index
      %30 = vector.load %arg7[%c0_22, %c0_23] : memref<8x128xf32, #tpu.memory_space<vmem>>, vector<8x128xf32>
      tpu.vector_store %arg7[%c0_22, %c0_23], %29 {strides = array<i32>} : memref<8x128xf32, #tpu.memory_space<vmem>>, vector<8x128xf32>,
    } else {
    }
    return
  }
  func.func @transform_0(%arg0: i32, %arg1: i32) -> (i32, i32) {
    %c2_i32 = arith.constant 2 : i32
    %0 = arith.muli %arg0, %c2_i32 : i32
    %1 = arith.addi %0, %arg1 : i32
    %c0_i32 = arith.constant 0 : i32
    %c0_i32_0 = arith.constant 0 : i32
    return %1, %c0_i32 : i32, i32
  }
  func.func @transform_1(%arg0: i32, %arg1: i32) -> (i32, i32) {
    %c0_i32 = arith.constant 0 : i32
    %c0_i32_0 = arith.constant 0 : i32
    %c0_i32_1 = arith.constant 0 : i32
    return %c0_i32, %c0_i32_0 : i32, i32
  }
  func.func @transform_2(%arg0: i32, %arg1: i32) -> (i32, i32) {
    %c0_i32 = arith.constant 0 : i32
    %c0_i32_0 = arith.constant 0 : i32
    %c0_i32_1 = arith.constant 0 : i32
    return %c0_i32, %c0_i32_0 : i32, i32
  }
  func.func @transform_3(%arg0: i32, %arg1: i32) -> (i32, i32) {
    %c0_i32 = arith.constant 0 : i32
    %c0_i32_0 = arith.constant 0 : i32
    %c0_i32_1 = arith.constant 0 : i32
    return %c0_i32, %c0_i32_0 : i32, i32
  }
  func.func @transform_4(%arg0: i32, %arg1: i32) -> (i32, i32) {
    %c0_i32 = arith.constant 0 : i32
    %c0_i32_0 = arith.constant 0 : i32
    %c0_i32_1 = arith.constant 0 : i32
    return %c0_i32, %c0_i32_0 : i32, i32
  }
  func.func @transform_5(%arg0: i32, %arg1: i32) -> (i32, i32) {
    %c0_i32 = arith.constant 0 : i32
    %c0_i32_0 = arith.constant 0 : i32
    return %arg0, %c0_i32 : i32, i32
  }
}

</mosaic_0001>

<bundles_post_ra>
// kernel: tpu_custom_call.1
= control target key start
LH: loop header
LB: loop body
LE: loop exit
PB: predicated region body
PF: predicated region fallthrough
CT: control target
= control target key end

     0   :  { %s1659_s0 = inlined_call_operand.hbm [shape: bf16[512,128], index: 0, kind: input, shape index: {}]   ;;  %s1660_s1 = inlined_call_operand.hbm [shape: bf16[128,128], index: 1, kind: input, shape index: {}]   ;;  %s1661_s2 = inlined_call_operand.vmem [shape: f32[1,128], index: 2, kind: input, shape index: {}]   ;;  %s1662_s3 = inlined_call_operand.hbm [shape: bf16[128,128], index: 3, kind: input, shape index: {}]   ;;  %s1663_s4 = inlined_call_operand.vmem [shape: f32[1,128], index: 4, kind: input, shape index: {}]   ;;  %s1664_s5 = inlined_call_operand.hbm [shape: f32[16,128], index: 5, kind: output, shape index: {}]  }
   0x1   :  { %1674 = sst [smem:[#allocation18_spill]] %s1660_s1 }
   0x2   :  { %1675 = sst [smem:[#allocation19_spill]] %s1661_s2 }
   0x3   :  { %1676 = sst [smem:[#allocation20_spill]] %s1662_s3 }
   0x4   :  { %1677 = sst [smem:[#allocation21_spill]] %s1663_s4 }
   0x5   :  { %1678 = sst [smem:[#allocation22_spill]] %s1664_s5 }
   0x6   :  { %10 = vsyncpa [#allocation4], 0 }
   0x7   :  { %12 = vsyncpa [#allocation4 + $0x1], 0 }
   0x8   :  { %13 = vsyncpa [#allocation7], 0 }
   0x9   :  { %14 = vsyncpa [#allocation5], 0 }
   0xa   :  { %16 = vsyncpa [#allocation5 + $0x1], 0  ;;  %s1390_s18 = smov 0   ;;  %s1392_s19 = smov 0  }
   0xb   :  { %s1394_s20 = smov 0   ;;  %s1396_s21 = smov 0  }
   0xc   :  { %s1398_s22 = smov 0   ;;  %s1400_s23 = smov 0  }
   0xd   :  { %s1402_s24 = smov 0   ;;  %s1404_s25 = smov 0  }
   0xe   :  { %s1406_s26 = smov 0   ;;  %s1408_s27 = smov 0  }
   0xf   :  { %s1410_s28 = smov 0  }
  0x10 LB: > { %1679 = sst [smem:[#allocation13_spill]] %s1306_s18  ;;  %s832_s29 = sadd.s32 4294967295, %s1346_s28   ;;  %s1346_s28 = sphi %s1410_s28, %s22_s28   ;;  %s1342_s27 = sphi %s1408_s27, %s1716_s27   ;;  %s1338_s26 = sphi %s1406_s26, %s1715_s26   ;;  %s1334_s25 = sphi %s1404_s25, %s1714_s25   ;;  %s1330_s24 = sphi %s1402_s24, %s1707_s24   ;;  %s1326_s23 = sphi %s1400_s23, %s1713_s23   ;;  %s1322_s22 = sphi %s1398_s22, %s1712_s22   ;;  %s1318_s21 = sphi %s1396_s21, %s1711_s21   ;;  %s1314_s20 = sphi %s1394_s20, %s1710_s20   ;;  %s1310_s19 = sphi %s1392_s19, %s1709_s19   ;;  %s1306_s18 = sphi %s1390_s18, %s1708_s18  }
  0x11   : > { %1680 = sst [smem:[#allocation14_spill]] %s1334_s25  ;;  %s833_s30 = sadd.s32 4294967294, %s1346_s28  }
  0x12   : > { %1681 = sst [smem:[#allocation15_spill]] %s1338_s26  ;;  %p58_p0 = scmp.ne.s32.totalorder %s1322_s22, %s1318_s21 }
  0x13   : > { %p1446_p1 = scmp.eq.s32.totalorder %s832_s29, 0  ;;  %p165_p2 = scmp.ne.s32.totalorder %s1314_s20, %s1310_s19 }
  0x14   : > { %p166_p4 = scmp.eq.s32.totalorder %s832_s29, 3  ;;  %p171_p5 = scmp.ne.s32.totalorder %s1310_s19, %s1306_s18 }
  0x15   : > { %p1455_p3 = por %p1446_p1, %p58_p0  ;;  %p172_p6 = scmp.eq.s32.totalorder %s833_s30, 3 }
  0x16   : > { %p1461_p7 = por %p166_p4, %p165_p2  ;;  %p836_p8 = scmp.ge.s32.totalorder %s1346_s28, 1 }
  0x17   : > { %p1466_p9 = por %p172_p6, %p171_p5  ;;  %p179_p10 = scmp.lt.s32.totalorder %s1346_s28, 5 }
  0x18   : > { %s1684_s9 = scalar_select %p1461_p7, 1, 0 }
  0x19   : > { %s1686_s10 = scalar_select %p1466_p9, 1, 0 }
  0x1a   : > { %1685 = sst [smem:[#allocation16_spill]] %s1684_s9  ;;  %p1471_p11 = pnand %p836_p8, %p179_p10 }
  0x1b   : > { %1687 = sst [smem:[#allocation17_spill]] %s1686_s10  ;;  %s1348_s12 = smov [#allocation6]  }
  0x1c   : > { %s191_s13 = sshll.u32 %s1348_s12, 4  ;;  %p999_p12 = pneg %p1471_p11  ;;  %s192_s13 = int_to_ptr.vmem [resolvable:$true] %s191_s13 }
  0x1d   : > { %s1349_s15 = smov [#allocation8]   ;;  %s1153_s17 = scalar_lea.vmem %s192_s13, 1024 }
  0x1e   : > { %p1479_p13 = pnand %p999_p12, %p1446_p1  ;;  %s207_s16 = sshll.u32 %s1349_s15, 4  ;;  %s208_s16 = int_to_ptr.vmem [resolvable:$true] %s207_s16 }
  0x1f   : > { %p1154_p2 = scmp.ne.s32.totalorder %s192_s13, %s1153_s17  ;;  %p1161_p6 = scmp.lt.s32.totalorder %s192_s13, %s192_s13 }
  0x20   : > { %p1144_p0 = pneg %p1479_p13  ;;  %p1162_p8 = scmp.lt.s32.totalorder %s1153_s17, %s1153_s17 }
  0x22   : > { %p1156_p4 = pnand %p1154_p2, %p1144_p0  ;;  %p1163_p10 = por %p1162_p8, %p1161_p6 }
  0x24   : > { %p1157_p5 = pneg %p1156_p4 }
  0x26   : > { %p1164_p12 = pnand %p1163_p10, %p1157_p5 }
  0x28   : > { %1167 = shalt.err (!%p1164_p12)
}
  0x29   : > { %s1665_s21 = smov 64   ;;  %s1666_s29 = smov 4  }
  0x2a   : > { %s1690_s1 = sld [smem:[#allocation18_spill]]  ;;  %s1179_s15 = scalar_lea.vmem %s208_s16, 1024 }
  0x2b   : > { %p1180_p2 = scmp.ne.s32.totalorder %s208_s16, %s1179_s15  ;;  %p1187_p5 = scmp.lt.s32.totalorder %s208_s16, %s208_s16 }
  0x2c   : > { %p1188_p8 = scmp.lt.s32.totalorder %s1179_s15, %s1179_s15 }
  0x2d   : > { %p1182_p4 = pnand %p1180_p2, %p1144_p0 }
  0x2e   : > { %p1189_p10 = por %p1188_p8, %p1187_p5 }
  0x2f   : > { %p1183_p6 = pneg %p1182_p4 }
  0x30   : > { %1002 = dma.hbm_to_vmem [thread:$0]  (!%p1479_p13), %s1690_s1, 1024, %s192_s13, [#allocation7], %s1665_s21, %s1665_s21, %s1666_s29  }
  0x31   : > { %p1190_p12 = pnand %p1189_p10, %p1183_p6 }
  0x33   : > { %1193 = shalt.err (!%p1190_p12)
}
  0x34   : > { %s1691_s3 = sld [smem:[#allocation20_spill]]  ;;  %s31_s13 = sadd.s32 1, %s1338_s26 }
  0x35   : > { %s34_s14 = sadd.s32 1, %s1342_s27  ;;  %p32_p0 = scmp.ge.s32.totalorder %s31_s13, 2 }
  0x36   : > { %s834_s30 = sshll.u32 %s1342_s27, 1  ;;  %s45_s15 = sadd.s32 1, %s1326_s23 }
  0x37   : > { %s39_s12 = sadd.s32 %s1338_s26, %s834_s30  ;;  %s1718_s13 = smov (%p32_p0, %s31_s13), 0 }
  0x38   : > { %s1720_s14 = smov (!%p32_p0, %s34_s14), %s1342_s27  ;;  %p52_p2 = scmp.ne.s32.totalorder %s1326_s23, %s1322_s22 }
  0x39   : > { %p53_p4 = scmp.eq.s32.totalorder %s1346_s28, 0  ;;  %p36_p6 = scmp.ge.s32.totalorder %s1720_s14, 2 }
  0x3a   : > { %1005 = dma.hbm_to_vmem [thread:$0]  (!%p1479_p13), %s1691_s3, 1024, %s208_s16, [#allocation7], %s1665_s21, %s1665_s21, %s1666_s29  }
  0x3b   : > { %p1016_p5 = scmp.lt.s32.totalorder %s1346_s28, 4  ;;  %p1519_p8 = por %p53_p4, %p52_p2 }
  0x3c   : > { %s224_s16 = sand.u32 1, %s1326_s23   ;;  %s1722_s14 = smov (%p36_p6, %s1720_s14), 0 }
  0x3d   : > { %s840_s17 = sshll.u32 %s224_s16, 6  ;;  %s835_s30 = sshll.u32 %s1722_s14, 1 }
  0x3e   : > { %s152_s21 = ssub.s32 %s1342_s27, %s1722_s14  ;;  %s41_s29 = sadd.s32 %s835_s30, %s1718_s13 }
  0x3f   : > { %p153_p13 = scmp.eq.s32.totalorder %s152_s21, 0  ;;  %s42_s1 = ssub.s32 %s39_s12, %s41_s29 }
  0x40   : > { %p43_p10 = scmp.eq.s32.totalorder %s42_s1, 0  ;;  %s880_s3 = sshll.u32 %s39_s12, 10 }
  0x41   : > { %s1693_s26 = sadd.s32 1, %s1314_s20  ;;  %s236_s25 = scalar_lea.hbm %s1659_s0, %s880_s3 }
  0x42   : > { %s1533_s10 = scalar_select %p153_p13, %s1314_s20, %s1693_s26  }
  0x43   : > { %s1536_s18 = scalar_select %p43_p10, %s1326_s23, %s45_s15  }
  0x44   : > { %s228_s4 = scalar_lea.vmem [#allocation3], %s840_s17  ;;  %p1545_p12 = pnand %p1016_p5, %p1519_p8 }
  0x45   : > { %s237_s2 = sshll.u32 %s228_s4, 4  ;;  %s225_s1 = scalar_lea.sflag [#allocation4], %s224_s16  ;;  %s238_s2 = int_to_ptr.vmem [resolvable:$true] %s237_s2 }
  0x46   : > { %p1196_p0 = pneg %p1545_p12  ;;  %s1207_s26 = scalar_lea.vmem %s238_s2, 1024 }
  0x47   : > { %p1208_p2 = scmp.ne.s32.totalorder %s238_s2, %s1207_s26  ;;  %s1352_s21 = smov [#allocation3]  }
  0x48   : > { %s1212_s5 = sshll.u32 %s1352_s21, 4  ;;  %s1213_s5 = int_to_ptr.vmem [resolvable:$false] %s1212_s5 }
  0x49   : > { %p1210_p4 = pnand %p1208_p2, %p1196_p0  ;;  %s1214_s3 = scalar_lea.vmem %s1213_s5, 2048 }
  0x4a   : > { %p1215_p13 = scmp.lt.s32.totalorder %s238_s2, %s1213_s5  ;;  %p1216_p10 = scmp.lt.s32.totalorder %s1214_s3, %s1207_s26 }
  0x4b   : > { %p1211_p6 = pneg %p1210_p4 }
  0x4c   : > { %p1217_p9 = por %p1216_p10, %p1215_p13 }
  0x4e   : > { %p1218_p7 = pnand %p1217_p9, %p1211_p6 }
  0x50   : > { %1221 = shalt.err (!%p1218_p7)
}
  0x51   : > { %s1695_s4 = smov 4   ;;  %s1696_s9 = smov 64  }
  0x52   : > { %1009 = dma.hbm_to_vmem [thread:$0]  (!%p1545_p12), %s236_s25, 1024, %s238_s2, %s225_s1, %s1696_s9, %s1696_s9, %s1695_s4  }
  0x53   : > { %249 = sbr.rel (%p1471_p11) target bundleno = 849 (0x351), region = 40  ;;  %s251_s29 = sand.u32 (!%p1471_p11), 1, %s1322_s22  }
  0x54   : > { %s845_s12 = sshll.u32 (!%p1471_p11), %s251_s29, 6  ;;  %s252_s15 = scalar_lea.sflag (!%p1471_p11), [#allocation4], %s251_s29 }
  0x55   : > { %s1559_s7 = scalar_lea.vmem (!%p1471_p11), [#allocation3], %s845_s12 }
  0x58   : > { %1293 = dma.done.wait (%p1455_p3), %s252_s15, 1024  }
  0x59   : > { %1295 = vsyncadd (%p1455_p3), %s252_s15, 4294966272 }
  0x5a   : > { %1297 = dma.done.wait (%p1446_p1), [#allocation7], 2048  }
  0x5b   : > { %1299 = vsyncadd (%p1446_p1), [#allocation7], 4294965248  ;;  %s287_s2 = sand.u32 1, %s1310_s19   ;;  %p849_p7 = scmp.ne.s32.totalorder %s1330_s24, 0 }
  0x5c   : > { %s1572_s25 = sshll.u32 %s287_s2, 3 }
  0x5d   : > { %s289_s11 = scalar_lea.vmem [#allocation9], %s1572_s25  ;;  %298 = sbr.rel (%p849_p7) target bundleno = 100 (0x64), region = 56 }
  0x62   : > { %v1353_v0 = vmov 0.0  }
  0x63   : > { %299 = vst [vmem:[#allocation2] sm:$0x1] %v1353_v0 }
  0x64 PF: > { %v1118_v1 = vld [vmem:[#allocation6 + $0x38] sm:$0xff]   ;;  %v1119_v2 = vld [vmem:[#allocation6 + $0x30] sm:$0xff]   ;;  %v1120_v3 = vld [vmem:[#allocation6 + $0x28] sm:$0xff]   ;;  %v1354_v17 = vmov 0.0   ;;  %vm1355_vm0 = vmmov 0   ;;  %s1697_s16 = sld [smem:[#allocation19_spill]] }
  0x65   : > { %915 = vmatprep.subr.bf16.mxu0 %v1118_v1  ;;  %v1121_v4 = vld [vmem:[#allocation6 + $0x20] sm:$0xff]   ;;  %v1122_v6 = vld [vmem:[#allocation6 + $0x18] sm:$0xff]   ;;  %v1123_v7 = vld [vmem:[#allocation6 + $0x10] sm:$0xff]   ;;  %947 = vmatprep.subr.bf16.mxu1 %v1354_v17  ;;  %p867_p1 = scmp.ne.s32.totalorder %s1330_s24, 1 }
  0x66   : > { %916 = vmatpush3.bf16.msra.mxu0 %v1118_v1  ;;  %v1126_v5 = vld [vmem:[%s1559_s7] sm:$0xff]   ;;  %v1124_v8 = vld [vmem:[#allocation6 + $0x8] sm:$0xff]   ;;  %v1128_v11 = vld [vmem:[%s1559_s7 + $0x10] sm:$0xff]   ;;  %963 = vmatprep.mubr.msk.bf16.mxu1 %vm1355_vm0, %v1354_v17  ;;  %s1698_s30 = sld [smem:[#allocation21_spill]] (!%p867_p1) }
  0x67   : > { %917 = vmatprep.subr.bf16.mxu0 %v1119_v2  ;;  %931 = vmatprep.mubr.bf16.mxu0 %v1126_v5  ;;  %v1125_v9 = vld [vmem:[#allocation6] sm:$0xff]   ;;  %v1127_v10 = vld [vmem:[%s1559_s7 + $0x8] sm:$0xff]   ;;  %v1129_v12 = vld [vmem:[%s1559_s7 + $0x18] sm:$0xff]  }
  0x68   : > { %v1130_v13 = vld [vmem:[%s1559_s7 + $0x20] sm:$0xff]   ;;  %v1131_v14 = vld [vmem:[%s1559_s7 + $0x28] sm:$0xff]   ;;  %v1132_v15 = vld [vmem:[%s1559_s7 + $0x30] sm:$0xff]  }
  0x69   : > { %v1133_v16 = vld [vmem:[%s1559_s7 + $0x38] sm:$0xff]  }
  0x6a   : > { %918 = vmatpush3.bf16.msra.mxu0 %v1119_v2  ;;  %v850_v31 = vld [vmem:[%s1697_s16] ss:$0 sm:$0xff] }
  0x6b   : > { %919 = vmatprep.subr.bf16.mxu0 %v1120_v3 }
  0x6e   : > { %920 = vmatpush3.bf16.msra.mxu0 %v1120_v3 }
  0x6f   : > { %921 = vmatprep.subr.bf16.mxu0 %v1121_v4 }
  0x72   : > { %922 = vmatpush3.bf16.msra.mxu0 %v1121_v4 }
  0x73   : > { %923 = vmatprep.subr.bf16.mxu0 %v1122_v6 }
  0x76   : > { %924 = vmatpush3.bf16.msra.mxu0 %v1122_v6 }
  0x77   : > { %925 = vmatprep.subr.bf16.mxu0 %v1123_v7 }
  0x7a   : > { %926 = vmatpush3.bf16.msra.mxu0 %v1123_v7 }
  0x7b   : > { %927 = vmatprep.subr.bf16.mxu0 %v1124_v8 }
  0x7e   : > { %928 = vmatpush3.bf16.msra.mxu0 %v1124_v8 }
  0x7f   : > { %929 = vmatprep.subr.bf16.mxu0 %v1125_v9 }
  0x82   : > { %930 = vmatpush3.bf16.msra.mxu0 %v1125_v9 }
  0x85   : > { %932 = vmatmul.mubr.bf16.vlgmr.msra.gmra.mxu0 %v1127_v10 }
  0x86   : > { %935 = vmatprep.mubr.bf16.mxu0 %v1128_v11  ;;  %v1356_v11 = vmov 1065369472  }
  0x8d   : > { %936 = vmatmul.mubr.bf16.gmra.mxu0 %v1129_v12  ;;  %v548_v12 = vld [vmem:[#allocation2] sm:$0x1] }
  0x8e   : > { %939 = vmatprep.mubr.bf16.mxu0 %v1130_v13 }
  0x95   : > { %940 = vmatmul.mubr.bf16.gmra.mxu0 %v1131_v14 }
  0x96   : > { %943 = vmatprep.mubr.bf16.mxu0 %v1132_v15 }
  0x9d   : > { %944 = vmatmul.mubr.bf16.gmra.mxu0 %v1133_v16 }
 0x145   : > { %v933_v18 = vpop.f32.mrf.mxu0 }
 0x146   : > { %v478_v0 = vadd.f32 %v933_v18, %v850_v31 }
 0x147   : > { %v469_v19 = vpop.f32.mrf.mxu0 }
 0x148   : > { %v534_v5 = vmax.f32 %v478_v0, 0.0  ;;  %v470_v6 = vadd.f32 %v850_v31, %v469_v19 }
 0x149   : > { %v934_v20 = vpop.f32.mrf.mxu0 }
 0x14a   : > { %v481_v61 = vadd.f32 %v934_v20, %v850_v31  ;;  %v532_v9 = vmax.f32 %v470_v6, 0.0 }
 0x14b   : > { %v472_v21 = vpop.f32.mrf.mxu0 }
 0x14c   : > { %v535_v2 = vmax.f32 %v481_v61, 0.0  ;;  %v473_v3 = vadd.f32 %v850_v31, %v472_v21 }
 0x14d   : > { %v937_v22 = vpop.f32.mrf.mxu0 }
 0x14e   : > { %v494_v54 = vadd.f32 %v937_v22, %v850_v31  ;;  %v550_v7 = vpack.c.bf16 %v535_v2, %v534_v5  ;;  %v533_v8 = vmax.f32 %v473_v3, 0.0 }
 0x14f   : > { %v485_v23 = vpop.f32.mrf.mxu0 }
 0x150   : > { %v538_v59 = vmax.f32 %v494_v54, 0.0  ;;  %v486_v60 = vadd.f32 %v850_v31, %v485_v23  ;;  %v549_v10 = vpack.c.bf16 %v533_v8, %v532_v9 }
 0x151   : > { %v938_v24 = vpop.f32.mrf.mxu0 }
 0x152   : > { %v497_v51 = vadd.f32 %v938_v24, %v850_v31  ;;  %v536_v1 = vmax.f32 %v486_v60, 0.0 }
 0x153   : > { %v488_v25 = vpop.f32.mrf.mxu0 }
 0x154   : > { %v539_v56 = vmax.f32 %v497_v51, 0.0  ;;  %v489_v57 = vadd.f32 %v850_v31, %v488_v25 }
 0x155   : > { %v941_v26 = vpop.f32.mrf.mxu0 }
 0x156   : > { %v510_v44 = vadd.f32 %v941_v26, %v850_v31  ;;  %v552_v62 = vpack.c.bf16 %v539_v56, %v538_v59  ;;  %v537_v63 = vmax.f32 %v489_v57, 0.0 }
 0x157   : > { %v501_v27 = vpop.f32.mrf.mxu0 }
 0x158   : > { %v542_v49 = vmax.f32 %v510_v44, 0.0  ;;  %v502_v50 = vadd.f32 %v850_v31, %v501_v27  ;;  %v551_v4 = vpack.c.bf16 %v537_v63, %v536_v1 }
 0x159   : > { %v942_v28 = vpop.f32.mrf.mxu0 }
 0x15a   : > { %v513_v41 = vadd.f32 %v942_v28, %v850_v31  ;;  %v540_v55 = vmax.f32 %v502_v50, 0.0 }
 0x15b   : > { %v504_v29 = vpop.f32.mrf.mxu0 }
 0x15c   : > { %v543_v46 = vmax.f32 %v513_v41, 0.0  ;;  %v505_v47 = vadd.f32 %v850_v31, %v504_v29 }
 0x15d   : > { %v945_v30 = vpop.f32.mrf.mxu0 }
 0x15e   : > { %v526_v33 = vadd.f32 %v945_v30, %v850_v31  ;;  %v554_v52 = vpack.c.bf16 %v543_v46, %v542_v49  ;;  %v541_v53 = vmax.f32 %v505_v47, 0.0 }
 0x15f   : > { %v517_v32 = vpop.f32.mrf.mxu0 }
 0x160   : > { %v546_v37 = vmax.f32 %v526_v33, 0.0  ;;  %v518_v38 = vadd.f32 %v850_v31, %v517_v32  ;;  %v553_v58 = vpack.c.bf16 %v541_v53, %v540_v55 }
 0x161   : > { %v946_v34 = vpop.f32.mrf.mxu0 }
 0x162   : > { %v529_v35 = vadd.f32 %v946_v34, %v850_v31  ;;  %v544_v45 = vmax.f32 %v518_v38, 0.0 }
 0x163   : > { %v520_v36 = vpop.f32.mrf.mxu0 }
 0x164   : > { %v547_v39 = vmax.f32 %v529_v35, 0.0  ;;  %v521_v40 = vadd.f32 %v850_v31, %v520_v36 }
 0x166   : > { %v545_v42 = vmax.f32 %v521_v40, 0.0  ;;  %v556_v43 = vpack.c.bf16 %v547_v39, %v546_v37 }
 0x168   : > { %948 = vmatpush3.bf16.msra.mxu1 %v556_v43  ;;  %v555_v48 = vpack.c.bf16 %v545_v42, %v544_v45 }
 0x169   : > { %949 = vmatprep.subr.bf16.mxu1 %v1354_v17 }
 0x16c   : > { %950 = vmatpush3.bf16.msra.mxu1 %v555_v48 }
 0x16d   : > { %951 = vmatprep.subr.bf16.mxu1 %v1354_v17 }
 0x170   : > { %952 = vmatpush3.bf16.msra.mxu1 %v554_v52 }
 0x171   : > { %953 = vmatprep.subr.bf16.mxu1 %v1354_v17 }
 0x174   : > { %954 = vmatpush3.bf16.msra.mxu1 %v553_v58 }
 0x175   : > { %955 = vmatprep.subr.bf16.mxu1 %v1354_v17 }
 0x178   : > { %956 = vmatpush3.bf16.msra.mxu1 %v552_v62 }
 0x179   : > { %957 = vmatprep.subr.bf16.mxu1 %v1354_v17 }
 0x17c   : > { %958 = vmatpush3.bf16.msra.mxu1 %v551_v4 }
 0x17d   : > { %959 = vmatprep.subr.bf16.mxu1 %v1354_v17 }
 0x180   : > { %960 = vmatpush3.bf16.msra.mxu1 %v550_v7 }
 0x181   : > { %961 = vmatprep.subr.bf16.mxu1 %v1354_v17 }
 0x184   : > { %962 = vmatpush3.bf16.msra.mxu1 %v549_v10 }
 0x187   : > { %964 = vmatmul.mubr.bf16.vlgmr.msra.gmra.mxu1 %v1356_v11 }
 0x247   : > { %v591_v13 = vpop.f32.mrf.mxu1 }
 0x248   : > { %v597_v14 = vadd.f32 %v591_v13, %v548_v12 }
 0x249   : > { %v965_v15 = vpop.f32.mrf.mxu1  ;;  %602 = sbr.rel (%p867_p1) target bundleno = 822 (0x336), region = 60 }
 0x24a   : > { %598 = vst [vmem:[#allocation2] sm:$0x1] %v597_v14 }
 0x24b   : > { %v594_v16 = vpop.f32.mrf.mxu1 }
 0x24d   : > { %v966_v18 = vpop.f32.mrf.mxu1 }
 0x24e   : > { %v1134_v19 = vld [vmem:[#allocation8 + $0x38] sm:$0xff]   ;;  %v1357_v20 = vmov 0.0   ;;  %v1135_v21 = vld [vmem:[#allocation8 + $0x30] sm:$0xff]   ;;  %vm1358_vm1 = vmmov 0   ;;  %v1136_v17 = vld [vmem:[#allocation8 + $0x28] sm:$0xff]   ;;  %v711_v30 = vlaneseq }
 0x24f   : > { %967 = vmatprep.subr.bf16.mxu0 %v1357_v20  ;;  %983 = vmatprep.mubr.msk.bf16.mxu0 %vm1358_vm1, %v1357_v20  ;;  %v1137_v22 = vld [vmem:[#allocation8 + $0x20] sm:$0xff]   ;;  %v1138_v23 = vld [vmem:[#allocation8 + $0x18] sm:$0xff]   ;;  %v1139_v24 = vld [vmem:[#allocation8 + $0x10] sm:$0xff]  }
 0x250   : > { %968 = vmatpush3.bf16.msra.mxu0 %v1134_v19  ;;  %v1140_v25 = vld [vmem:[#allocation8 + $0x8] sm:$0xff]   ;;  %v1141_v28 = vld [vmem:[#allocation8] sm:$0xff]   ;;  %v712_v31 = vshrl.u32 %v711_v30, 7  ;;  %v622_v32 = vld [vmem:[%s1698_s30] sm:$0x1] }
 0x251   : > { %969 = vmatprep.subr.bf16.mxu0 %v1357_v20  ;;  %v603_v26 = vld [vmem:[#allocation2] sm:$0x1] }
 0x252   : > { %v604_v27 = vmul.f32 0.00390625, %v603_v26  ;;  %v713_v33 = vsub.s32 0, %v712_v31 }
 0x254   : > { %970 = vmatpush3.bf16.msra.mxu0 %v1135_v21  ;;  %v605_v29 = vpack.c.bf16 %v604_v27, %v604_v27 }
 0x255   : > { %971 = vmatprep.subr.bf16.mxu0 %v1357_v20 }
 0x258   : > { %972 = vmatpush3.bf16.msra.mxu0 %v1136_v17 }
 0x259   : > { %973 = vmatprep.subr.bf16.mxu0 %v1357_v20 }
 0x25c   : > { %974 = vmatpush3.bf16.msra.mxu0 %v1137_v22 }
 0x25d   : > { %975 = vmatprep.subr.bf16.mxu0 %v1357_v20 }
 0x260   : > { %976 = vmatpush3.bf16.msra.mxu0 %v1138_v23 }
 0x261   : > { %977 = vmatprep.subr.bf16.mxu0 %v1357_v20 }
 0x264   : > { %978 = vmatpush3.bf16.msra.mxu0 %v1139_v24 }
 0x265   : > { %979 = vmatprep.subr.bf16.mxu0 %v1357_v20 }
 0x268   : > { %980 = vmatpush3.bf16.msra.mxu0 %v1140_v25 }
 0x269   : > { %981 = vmatprep.subr.bf16.mxu0 %v1357_v20 }
 0x26c   : > { %982 = vmatpush3.bf16.msra.mxu0 %v1141_v28 }
 0x26f   : > { %984 = vmatmul.mubr.bf16.vlgmr.msra.gmra.mxu0 %v605_v29 }
 0x32f   : > { %v705_v34 = vpop.f32.mrf.mxu0 }
 0x330   : > { %v706_v35 = vadd.f32 %v705_v34, %v622_v32 }
 0x331   : > { %v985_v36 = vpop.f32.mrf.mxu0 }
 0x332   : > { %v714_v37 = vrot.slane %v706_v35, %v713_v33 }
 0x333   : > { %v708_v38 = vpop.f32.mrf.mxu0 }
 0x334   : > { %715 = vst [vmem:[%s289_s11] sm:$0xff] %v714_v37 }
 0x335   : > { %v986_v39 = vpop.f32.mrf.mxu0 }
 0x336 PF: > { %s1699_s1 = sld [smem:[#allocation14_spill]]  ;;  %s730_s29 = sshll.u32 %s289_s11, 4  ;;  %s731_s29 = int_to_ptr.vmem [resolvable:$true] %s730_s29 }
 0x337   : > { %s1700_s26 = sld [smem:[#allocation16_spill]]  ;;  %s717_s12 = scalar_lea.sflag [#allocation5], %s287_s2 }
 0x338   : > { %s1701_s4 = sld [smem:[#allocation22_spill]]  ;;  %s1222_s15 = scalar_lea.vmem %s731_s29, 128 }
 0x339   : > { %p1223_p3 = scmp.ne.s32.totalorder %s731_s29, %s1222_s15  ;;  %s1359_s7 = smov [#allocation9]  }
 0x33a   : > { %s1226_s6 = sshll.u32 %s1359_s7, 4  ;;  %s1227_s6 = int_to_ptr.vmem [resolvable:$false] %s1226_s6 }
 0x33b   : > { %s1228_s8 = scalar_lea.vmem %s1227_s6, 256  ;;  %p1229_p8 = scmp.lt.s32.totalorder %s731_s29, %s1227_s6 }
 0x33c   : > { %s877_s21 = sshll.u32 %s1699_s1, 7  ;;  %p1230_p12 = scmp.lt.s32.totalorder %s1228_s8, %s1222_s15 }
 0x33d   : > { %p1702_p9 = scmp.ne.s32.totalorder %s1700_s26, 0 }
 0x33e   : > { %s728_s9 = scalar_lea.hbm %s1701_s4, %s877_s21  ;;  %p1231_p0 = por %p1230_p12, %p1229_p8 }
 0x33f   : > { %p1224_p11 = pnand %p1223_p3, %p1702_p9 }
 0x341   : > { %p1225_p5 = pneg %p1224_p11 }
 0x343   : > { %p1232_p2 = pnand %p1231_p0, %p1225_p5 }
 0x345   : > { %1235 = shalt.err (!%p1232_p2)
}
 0x346   : > { %s1236_s16 = scalar_lea.hbm %s728_s9, 128  ;;  %s1240_s11 = scalar_lea.hbm %s1701_s4, 256 }
 0x347   : > { %p1237_p4 = scmp.ne.s32.totalorder %s728_s9, %s1236_s16  ;;  %p1241_p10 = scmp.lt.s32.totalorder %s728_s9, %s1701_s4 }
 0x348   : > { %p1242_p7 = scmp.lt.s32.totalorder %s1240_s11, %s1236_s16 }
 0x349   : > { %p1238_p6 = pnand %p1237_p4, %p1702_p9 }
 0x34a   : > { %p1243_p1 = por %p1242_p7, %p1241_p10 }
 0x34b   : > { %p1239_p13 = pneg %p1238_p6 }
 0x34d   : > { %p1244_p3 = pnand %p1243_p1, %p1239_p13 }
 0x34f   : > { %1247 = shalt.err (!%p1244_p3)
}
 0x350   : > { %997 = dma.vmem_to_hbm [thread:$0]  (%p1702_p9), %s731_s29, 128, %s728_s9, %s717_s12  }
 0x351 PF: > { %s1703_s30 = sld [smem:[#allocation13_spill]]  ;;  %p1019_p11 = scmp.ge.s32.totalorder %s1346_s28, 2 }
 0x352   : > { %s1704_s1 = sld [smem:[#allocation17_spill]] }
 0x357   : > { %s742_s21 = sand.u32 1, %s1703_s30  }
 0x358   : > { %p1705_p5 = scmp.ne.s32.totalorder %s1704_s1, 0  ;;  %s743_s5 = scalar_lea.sflag [#allocation5], %s742_s21 }
 0x35a   : > { %p1011_p8 = pnand %p1019_p11, %p1705_p5 }
 0x35c   : > { %p1012_p12 = pneg %p1011_p8 }
 0x35e   : > { %1301 = dma.done.wait (%p1012_p12), %s743_s5, 128  }
 0x35f   : > { %1303 = vsyncadd (%p1012_p12), %s743_s5, 4294967168  ;;  %s22_s28 = sadd.s32 1, %s1346_s28   ;;  %s1706_s26 = smov %s1536_s18 }
 0x360   : > { %p19_p0 = scmp.ge.s32.totalorder %s22_s28, 6   ;;  %s1707_s24 = sld [smem:[#allocation15_spill]] }
 0x361   : > { %s1708_s18 = smov %s1310_s19  ;;  %s1709_s19 = smov %s1314_s20 }
 0x362   : > { %s1710_s20 = smov %s1533_s10  ;;  %s1711_s21 = smov %s1322_s22 }
 0x363   : > { %s1712_s22 = smov %s1326_s23  ;;  %s1713_s23 = smov %s1706_s26 }
 0x364   : > { %s1714_s25 = smov %s1342_s27  ;;  %s1715_s26 = smov %s1718_s13 }
 0x365   : > { %s1716_s27 = smov %s1722_s14  ;;  %21 = sbr.rel (!%p19_p0) target bundleno = 16 (0x10), region = 101 }
 0x36a   :  { %748 = vsyncpa [#allocation4], 1 }
 0x36b   :  { %750 = vsyncpa [#allocation4 + $0x1], 1 }
 0x36c   :  { %751 = vsyncpa [#allocation7], 1 }
 0x36d   :  { %752 = vsyncpa [#allocation5], 1 }
 0x36e   :  { %754 = vsyncpa [#allocation5 + $0x1], 1 }

</bundles_post_ra>
